<compile_context>
chip_gen: v5e
topology: v5e:2x2
jax: 0.10.0
libtpu: 0.0.40
codegen_flags: <defaults>
</compile_context>

<pallas_src>
import functools
import math

import jax
import jax.numpy as jnp
import numpy as np
from jax import lax
from jax.experimental import pallas as pl
from jax.experimental.pallas import tpu as pltpu

NEG_BIG = -1e30  # finite causal-mask value; only ever applied to f32 scores.


def _vmem_limit_bytes():
    """Per-generation scoped-VMEM budget: ~100 MiB on v5e/v6e (128 MiB physical),
    ~48 MiB on v7x (64 MiB physical), conservative fallback otherwise."""
    try:
        cap = int(pltpu.get_tpu_info().vmem_capacity_bytes)
    except Exception:
        cap = 64 * 1024 * 1024
    return max(32 * 1024 * 1024, min(100 * 1024 * 1024, cap - 16 * 1024 * 1024))


# --------------------------------------------------------------------------- #
# 1) QKV projection: x (B,T,E) @ head-major weights (H,E,dh) -> (B,H,T,dh).
#    Full-depth K=E GEMMs; done once (not re-done per query block).
# --------------------------------------------------------------------------- #
def _qkv_proj_kernel(x_ref, wq_ref, wk_ref, wv_ref, q_ref, k_ref, v_ref):
    x = x_ref[0]                                   # (T, E) bf16
    q_ref[0, 0] = jnp.dot(x, wq_ref[0], preferred_element_type=jnp.float32).astype(q_ref.dtype)
    k_ref[0, 0] = jnp.dot(x, wk_ref[0], preferred_element_type=jnp.float32).astype(k_ref.dtype)
    v_ref[0, 0] = jnp.dot(x, wv_ref[0], preferred_element_type=jnp.float32).astype(v_ref.dtype)


# --------------------------------------------------------------------------- #
# 2) Flash-style blocked causal attention core.
# --------------------------------------------------------------------------- #
def _flash_attn_kernel(q_ref, k_ref, v_ref, o_ref, m_ref, l_ref, acc_ref, *, tq, tk):
    qi = pl.program_id(2)
    ki = pl.program_id(3)

    @pl.when(ki == 0)
    def _():
        m_ref[...] = jnp.full_like(m_ref, -jnp.inf)
        l_ref[...] = jnp.zeros_like(l_ref)
        acc_ref[...] = jnp.zeros_like(acc_ref)

    q_start = qi * tq
    k_start = ki * tk

    # Causal block skip: KV blocks entirely above the diagonal contribute nothing.
    # TODO(synk): also skip their K/V DMA (kv index remapping / bounded inner loop);
    # this pl.when only skips the compute.
    @pl.when(k_start <= q_start + tq - 1)
    def _():
        q = q_ref[0, 0]                            # (tq, dh) bf16, scale folded in
        k = k_ref[0, 0]                            # (tk, dh) bf16
        v = v_ref[0, 0]                            # (tk, dh) bf16

        # q @ k^T expressed directly as a contraction (no materialized transpose).
        s = lax.dot_general(q, k, (((1,), (1,)), ((), ())),
                            preferred_element_type=jnp.float32)   # (tq, tk) f32

        # Per-tile causal mask from block-offset iotas (no (T, T) mask in VMEM).
        # Only the diagonal-straddling block strictly needs it; it is cheap VPU
        # work next to the two MXU matmuls, so apply it inside the compute branch.
        row = q_start + lax.broadcasted_iota(jnp.int32, (tq, tk), 0)
        col = k_start + lax.broadcasted_iota(jnp.int32, (tq, tk), 1)
        s = jnp.where(col > row, NEG_BIG, s)       # mask stays finite in f32

        # Online-softmax update carried in VMEM scratch.
        m_prev = m_ref[...]
        m_new = jnp.maximum(m_prev, jnp.max(s, axis=-1, keepdims=True))
        alpha = jnp.exp(m_prev - m_new)
        p = jnp.exp(s - m_new)                                      # unnormalized
        l_ref[...] = alpha * l_ref[...] + jnp.sum(p, axis=-1, keepdims=True)
        acc_ref[...] = alpha * acc_ref[...] + jnp.dot(
            p.astype(jnp.bfloat16), v, preferred_element_type=jnp.float32)
        m_ref[...] = m_new

    @pl.when(ki == pl.num_programs(3) - 1)
    def _():
        # Exact final normalization (O(tq*dh), negligible) for tighter parity
        # with the f32 softmax reference.
        o_ref[0, 0] = (acc_ref[...] / l_ref[...]).astype(o_ref.dtype)


# --------------------------------------------------------------------------- #
# 3) Output projection: one full-depth (K = E) GEMM + bias.
# --------------------------------------------------------------------------- #
def _out_proj_kernel(ctx_ref, wo_ref, bo_ref, o_ref):
    out = jnp.dot(ctx_ref[0], wo_ref[...], preferred_element_type=jnp.float32)
    o_ref[0] = (out + bo_ref[...].astype(jnp.float32)).astype(o_ref.dtype)


def multi_head_attention(x, wq_t, wk_t, wv_t, wo_t, bo, *, num_heads,
                         q_block=128, kv_block=128):
    """Forward pass of the PyTorch MultiHeadAttention module (eval mode).

    Linear weights are passed PRE-TRANSPOSED to [in, out] so y = x @ W (+ b)
    matches torch.nn.Linear.  `bo` is the out_proj bias with shape (1, E).
    """
    B, T, E = x.shape
    assert E % num_heads == 0
    dh = E // num_heads
    scale = 1.0 / math.sqrt(dh)

    # Block sizes: full T at toy shapes; 128 (v5e) / 256-512 (v6e) at prod T.
    tq = min(q_block, T)
    tk = min(kv_block, T)
    assert T % tq == 0 and T % tk == 0, "T must be divisible by the block sizes"
    n_q, n_kv = T // tq, T // tk

    vmem_limit = _vmem_limit_bytes()

    # bf16 MXU operands + half the HBM<->VMEM DMA; f32 accumulation in-kernel.
    x_b = x.astype(jnp.bfloat16)
    # Head-major projection weights (H, E, dh): each head is a leading-axis
    # block (free), never a sub-128-lane slice.  Scale folded into Wq.
    wq_h = (wq_t * scale).astype(jnp.bfloat16).reshape(E, num_heads, dh).transpose(1, 0, 2)
    wk_h = wk_t.astype(jnp.bfloat16).reshape(E, num_heads, dh).transpose(1, 0, 2)
    wv_h = wv_t.astype(jnp.bfloat16).reshape(E, num_heads, dh).transpose(1, 0, 2)
    wo_b = wo_t.astype(jnp.bfloat16)

    # ---- 1) QKV projections -> head-major (B, H, T, dh) bf16.
    # TODO(synk): for E >= ~2048, add a T-tile grid axis so the (T, E) activation
    # block stays inside the per-generation VMEM budget.
    qkv_shape = jax.ShapeDtypeStruct((B, num_heads, T, dh), jnp.bfloat16)
    q, k, v = pl.pallas_call(
        _qkv_proj_kernel,
        out_shape=(qkv_shape, qkv_shape, qkv_shape),
        grid=(B, num_heads),
        in_specs=[
            pl.BlockSpec((1, T, E), lambda b, h: (b, 0, 0)),        # x (bf16)
            pl.BlockSpec((1, E, dh), lambda b, h: (h, 0, 0)),       # Wq head slab
            pl.BlockSpec((1, E, dh), lambda b, h: (h, 0, 0)),       # Wk head slab
            pl.BlockSpec((1, E, dh), lambda b, h: (h, 0, 0)),       # Wv head slab
        ],
        out_specs=(
            pl.BlockSpec((1, 1, T, dh), lambda b, h: (b, h, 0, 0)),
            pl.BlockSpec((1, 1, T, dh), lambda b, h: (b, h, 0, 0)),
            pl.BlockSpec((1, 1, T, dh), lambda b, h: (b, h, 0, 0)),
        ),
        compiler_params=pltpu.CompilerParams(
            dimension_semantics=("parallel", "parallel"),
            vmem_limit_bytes=vmem_limit,
        ),
    )(x_b, wq_h, wk_h, wv_h)

    # ---- 2) Flash-style blocked causal attention over (B, H, q-block, kv-block).
    ctx = pl.pallas_call(
        functools.partial(_flash_attn_kernel, tq=tq, tk=tk),
        out_shape=jax.ShapeDtypeStruct((B, num_heads, T, dh), jnp.bfloat16),
        grid=(B, num_heads, n_q, n_kv),
        in_specs=[
            pl.BlockSpec((1, 1, tq, dh), lambda b, h, qi, ki: (b, h, qi, 0)),  # Q
            pl.BlockSpec((1, 1, tk, dh), lambda b, h, qi, ki: (b, h, ki, 0)),  # K
            pl.BlockSpec((1, 1, tk, dh), lambda b, h, qi, ki: (b, h, ki, 0)),  # V
        ],
        out_specs=pl.BlockSpec((1, 1, tq, dh), lambda b, h, qi, ki: (b, h, qi, 0)),
        scratch_shapes=[
            pltpu.VMEM((tq, 1), jnp.float32),     # running row max m
            pltpu.VMEM((tq, 1), jnp.float32),     # running denom  l
            pltpu.VMEM((tq, dh), jnp.float32),    # unnormalized output accumulator
        ],
        compiler_params=pltpu.CompilerParams(
            # batch / head / q-block all parallel (megacore even when B == 1);
            # kv axis is the softmax reduction -> arbitrary.
            dimension_semantics=("parallel", "parallel", "parallel", "arbitrary"),
            vmem_limit_bytes=vmem_limit,
        ),
    )(q, k, v)

    # Head-major -> token-major (B, T, E); cheap XLA relayout at production dh.
    ctx_te = ctx.transpose(0, 2, 1, 3).reshape(B, T, E)

    # ---- 3) Output projection: single full-depth (K = E) GEMM + bias.
    # TODO(synk): for E >= ~2048, tile Wo along its output dim with its own grid
    # axis and consider pipeline_mode=pl.Buffered(1) / fp8 weights on v7x so the
    # resident weight fits under the 64 MiB VMEM cap.
    out = pl.pallas_call(
        _out_proj_kernel,
        out_shape=jax.ShapeDtypeStruct((B, T, E), x.dtype),
        grid=(B,),
        in_specs=[
            pl.BlockSpec((1, T, E), lambda b: (b, 0, 0)),   # ctx (bf16)
            pl.BlockSpec((E, E), lambda b: (0, 0)),         # Wo^T (bf16)
            pl.BlockSpec((1, E), lambda b: (0, 0)),         # out_proj bias (f32)
        ],
        out_specs=pl.BlockSpec((1, T, E), lambda b: (b, 0, 0)),
        compiler_params=pltpu.CompilerParams(
            dimension_semantics=("parallel",),
            vmem_limit_bytes=vmem_limit,
        ),
    )(ctx_te, wo_b, bo)

    # TODO(synk): dropout is treated as eval-mode identity (matches the original).
    return out


def reference_mha(x, wq_t, wk_t, wv_t, wo_t, bo, *, num_heads):
    """Pure-JAX f32 reference reproducing the PyTorch forward (eval mode)."""
    B, T, E = x.shape
    dh = E // num_heads
    q = (x @ wq_t).reshape(B, T, num_heads, dh).transpose(0, 2, 1, 3)
    k = (x @ wk_t).reshape(B, T, num_heads, dh).transpose(0, 2, 1, 3)
    v = (x @ wv_t).reshape(B, T, num_heads, dh).transpose(0, 2, 1, 3)
    s = jnp.einsum("bhqd,bhkd->bhqk", q, k) / math.sqrt(dh)
    mask = jnp.triu(jnp.ones((T, T), dtype=bool), k=1)
    s = jnp.where(mask, -jnp.inf, s)
    p = jax.nn.softmax(s, axis=-1)
    ctx = jnp.einsum("bhqk,bhkd->bhqd", p, v)
    ctx = ctx.transpose(0, 2, 1, 3).reshape(B, T, E)
    return ctx @ wo_t + bo[0]


if __name__ == "__main__":
    # Small shapes consistent with the module: B=2, context T=8, embdg_dim=32,
    # num_heads=4 (head_dim=8), qkv_bias=False, dropout = eval-mode identity.
    B, T, E, H = 2, 8, 32, 4
    key = jax.random.PRNGKey(0)
    kx, kq, kk, kv, ko, kb = jax.random.split(key, 6)

    x = jax.random.normal(kx, (B, T, E), dtype=jnp.float32)

    # PyTorch Linear weights are (out, in); generate then transpose to (in, out).
    std = 1.0 / math.sqrt(E)
    wq = jax.random.uniform(kq, (E, E), jnp.float32, -std, std).T
    wk = jax.random.uniform(kk, (E, E), jnp.float32, -std, std).T
    wv = jax.random.uniform(kv, (E, E), jnp.float32, -std, std).T
    wo = jax.random.uniform(ko, (E, E), jnp.float32, -std, std).T
    bo = jax.random.uniform(kb, (1, E), jnp.float32, -std, std)

    out = multi_head_attention(x, wq, wk, wv, wo, bo, num_heads=H)
    out = jax.block_until_ready(out)

    ref = reference_mha(x, wq, wk, wv, wo, bo, num_heads=H)
    # Kernels use bf16 MXU operands (f32 accumulation), so compare against the
    # f32 reference with a bf16-appropriate tolerance.
    np.testing.assert_allclose(np.asarray(out), np.asarray(ref), rtol=5e-2, atol=5e-2)

    print("KERNEL_OK")
</pallas_src>

<mosaic_0001>
module attributes {stable_mosaic.version = 11 : i64} {
  func.func @_qkv_proj_kernel(%arg0: i32, %arg1: i32, %arg2: memref<1x8x32xbf16, #tpu.memory_space<vmem>>, %arg3: memref<1x32x8xbf16, #tpu.memory_space<vmem>>, %arg4: memref<1x32x8xbf16, #tpu.memory_space<vmem>>, %arg5: memref<1x32x8xbf16, #tpu.memory_space<vmem>>, %arg6: memref<1x1x8x8xbf16, #tpu.memory_space<vmem>>, %arg7: memref<1x1x8x8xbf16, #tpu.memory_space<vmem>>, %arg8: memref<1x1x8x8xbf16, #tpu.memory_space<vmem>>) attributes {dimension_semantics = [#tpu.dimension_semantics<parallel>, #tpu.dimension_semantics<parallel>], iteration_bounds = array<i64: 2, 4>, scalar_prefetch = 0 : i64, scratch_operands = 0 : i64, tpu.core_type = #tpu.core_type<tc>, window_params = [{transform_indices = @transform_0, window_bounds = array<i64: 1, 8, 32>}, {transform_indices = @transform_1, window_bounds = array<i64: 1, 32, 8>}, {transform_indices = @transform_2, window_bounds = array<i64: 1, 32, 8>}, {transform_indices = @transform_3, window_bounds = array<i64: 1, 32, 8>}, {transform_indices = @transform_4, window_bounds = array<i64: 1, 1, 8, 8>}, {transform_indices = @transform_5, window_bounds = array<i64: 1, 1, 8, 8>}, {transform_indices = @transform_6, window_bounds = array<i64: 1, 1, 8, 8>}]} {
    %c0 = arith.constant 0 : index
    %c0_0 = arith.constant 0 : index
    %c0_1 = arith.constant 0 : index
    %0 = vector.load %arg2[%c0, %c0_0, %c0_1] : memref<1x8x32xbf16, #tpu.memory_space<vmem>>, vector<1x8x32xbf16>
    %1 = vector.shape_cast %0 : vector<1x8x32xbf16> to vector<8x32xbf16>
    %c0_2 = arith.constant 0 : index
    %c0_3 = arith.constant 0 : index
    %c0_4 = arith.constant 0 : index
    %2 = vector.load %arg3[%c0_2, %c0_3, %c0_4] : memref<1x32x8xbf16, #tpu.memory_space<vmem>>, vector<1x32x8xbf16>
    %3 = vector.shape_cast %2 : vector<1x32x8xbf16> to vector<32x8xbf16>
    %cst = arith.constant dense<0.000000e+00> : vector<8x8xf32>
    %4 = tpu.matmul %1, %3, %cst {dimension_numbers = #tpu.dot_dimension_numbers<[1], [0], [0], [1], [0, 0, 1, 1], [], []>} : vector<8x32xbf16>, vector<32x8xbf16>, vector<8x8xf32> -> vector<8x8xf32>
    %5 = arith.truncf %4 : vector<8x8xf32> to vector<8x8xbf16>
    %c0_5 = arith.constant 0 : index
    %c0_6 = arith.constant 0 : index
    %c0_7 = arith.constant 0 : index
    %c0_8 = arith.constant 0 : index
    %6 = vector.load %arg6[%c0_5, %c0_6, %c0_7, %c0_8] : memref<1x1x8x8xbf16, #tpu.memory_space<vmem>>, vector<1x1x8x8xbf16>
    %7 = vector.shape_cast %6 : vector<1x1x8x8xbf16> to vector<8x8xbf16>
    %8 = vector.shape_cast %5 : vector<8x8xbf16> to vector<1x1x8x8xbf16>
    tpu.vector_store %arg6[%c0_5, %c0_6, %c0_7, %c0_8], %8 {strides = array<i32>} : memref<1x1x8x8xbf16, #tpu.memory_space<vmem>>, vector<1x1x8x8xbf16>,
    %c0_9 = arith.constant 0 : index
    %c0_10 = arith.constant 0 : index
    %c0_11 = arith.constant 0 : index
    %9 = vector.load %arg4[%c0_9, %c0_10, %c0_11] : memref<1x32x8xbf16, #tpu.memory_space<vmem>>, vector<1x32x8xbf16>
    %10 = vector.shape_cast %9 : vector<1x32x8xbf16> to vector<32x8xbf16>
    %cst_12 = arith.constant dense<0.000000e+00> : vector<8x8xf32>
    %11 = tpu.matmul %1, %10, %cst_12 {dimension_numbers = #tpu.dot_dimension_numbers<[1], [0], [0], [1], [0, 0, 1, 1], [], []>} : vector<8x32xbf16>, vector<32x8xbf16>, vector<8x8xf32> -> vector<8x8xf32>
    %12 = arith.truncf %11 : vector<8x8xf32> to vector<8x8xbf16>
    %c0_13 = arith.constant 0 : index
    %c0_14 = arith.constant 0 : index
    %c0_15 = arith.constant 0 : index
    %c0_16 = arith.constant 0 : index
    %13 = vector.load %arg7[%c0_13, %c0_14, %c0_15, %c0_16] : memref<1x1x8x8xbf16, #tpu.memory_space<vmem>>, vector<1x1x8x8xbf16>
    %14 = vector.shape_cast %13 : vector<1x1x8x8xbf16> to vector<8x8xbf16>
    %15 = vector.shape_cast %12 : vector<8x8xbf16> to vector<1x1x8x8xbf16>
    tpu.vector_store %arg7[%c0_13, %c0_14, %c0_15, %c0_16], %15 {strides = array<i32>} : memref<1x1x8x8xbf16, #tpu.memory_space<vmem>>, vector<1x1x8x8xbf16>,
    %c0_17 = arith.constant 0 : index
    %c0_18 = arith.constant 0 : index
    %c0_19 = arith.constant 0 : index
    %16 = vector.load %arg5[%c0_17, %c0_18, %c0_19] : memref<1x32x8xbf16, #tpu.memory_space<vmem>>, vector<1x32x8xbf16>
    %17 = vector.shape_cast %16 : vector<1x32x8xbf16> to vector<32x8xbf16>
    %cst_20 = arith.constant dense<0.000000e+00> : vector<8x8xf32>
    %18 = tpu.matmul %1, %17, %cst_20 {dimension_numbers = #tpu.dot_dimension_numbers<[1], [0], [0], [1], [0, 0, 1, 1], [], []>} : vector<8x32xbf16>, vector<32x8xbf16>, vector<8x8xf32> -> vector<8x8xf32>
    %19 = arith.truncf %18 : vector<8x8xf32> to vector<8x8xbf16>
    %c0_21 = arith.constant 0 : index
    %c0_22 = arith.constant 0 : index
    %c0_23 = arith.constant 0 : index
    %c0_24 = arith.constant 0 : index
    %20 = vector.load %arg8[%c0_21, %c0_22, %c0_23, %c0_24] : memref<1x1x8x8xbf16, #tpu.memory_space<vmem>>, vector<1x1x8x8xbf16>
    %21 = vector.shape_cast %20 : vector<1x1x8x8xbf16> to vector<8x8xbf16>
    %22 = vector.shape_cast %19 : vector<8x8xbf16> to vector<1x1x8x8xbf16>
    tpu.vector_store %arg8[%c0_21, %c0_22, %c0_23, %c0_24], %22 {strides = array<i32>} : memref<1x1x8x8xbf16, #tpu.memory_space<vmem>>, vector<1x1x8x8xbf16>,
    return
  }
  func.func @transform_0(%arg0: i32, %arg1: i32) -> (i32, i32, i32) {
    %c0_i32 = arith.constant 0 : i32
    %c0_i32_0 = arith.constant 0 : i32
    %c0_i32_1 = arith.constant 0 : i32
    return %arg0, %c0_i32, %c0_i32_0 : i32, i32, i32
  }
  func.func @transform_1(%arg0: i32, %arg1: i32) -> (i32, i32, i32) {
    %c0_i32 = arith.constant 0 : i32
    %c0_i32_0 = arith.constant 0 : i32
    %c0_i32_1 = arith.constant 0 : i32
    return %arg1, %c0_i32, %c0_i32_0 : i32, i32, i32
  }
  func.func @transform_2(%arg0: i32, %arg1: i32) -> (i32, i32, i32) {
    %c0_i32 = arith.constant 0 : i32
    %c0_i32_0 = arith.constant 0 : i32
    %c0_i32_1 = arith.constant 0 : i32
    return %arg1, %c0_i32, %c0_i32_0 : i32, i32, i32
  }
  func.func @transform_3(%arg0: i32, %arg1: i32) -> (i32, i32, i32) {
    %c0_i32 = arith.constant 0 : i32
    %c0_i32_0 = arith.constant 0 : i32
    %c0_i32_1 = arith.constant 0 : i32
    return %arg1, %c0_i32, %c0_i32_0 : i32, i32, i32
  }
  func.func @transform_4(%arg0: i32, %arg1: i32) -> (i32, i32, i32, i32) {
    %c0_i32 = arith.constant 0 : i32
    %c0_i32_0 = arith.constant 0 : i32
    %c0_i32_1 = arith.constant 0 : i32
    return %arg0, %arg1, %c0_i32, %c0_i32_0 : i32, i32, i32, i32
  }
  func.func @transform_5(%arg0: i32, %arg1: i32) -> (i32, i32, i32, i32) {
    %c0_i32 = arith.constant 0 : i32
    %c0_i32_0 = arith.constant 0 : i32
    %c0_i32_1 = arith.constant 0 : i32
    return %arg0, %arg1, %c0_i32, %c0_i32_0 : i32, i32, i32, i32
  }
  func.func @transform_6(%arg0: i32, %arg1: i32) -> (i32, i32, i32, i32) {
    %c0_i32 = arith.constant 0 : i32
    %c0_i32_0 = arith.constant 0 : i32
    %c0_i32_1 = arith.constant 0 : i32
    return %arg0, %arg1, %c0_i32, %c0_i32_0 : i32, i32, i32, i32
  }
}

</mosaic_0001>

<bundles_post_ra>
// kernel: tpu_custom_call.1
= control target key start
LH: loop header
LB: loop body
LE: loop exit
PB: predicated region body
PF: predicated region fallthrough
CT: control target
= control target key end

     0   :  { %s1228_s0 = inlined_call_operand.vmem [shape: bf16[2,8,32], index: 0, kind: input, shape index: {}]   ;;  %s1229_s1 = inlined_call_operand.vmem [shape: bf16[4,32,8], index: 1, kind: input, shape index: {}]   ;;  %s1230_s2 = inlined_call_operand.vmem [shape: bf16[4,32,8], index: 2, kind: input, shape index: {}]   ;;  %s1231_s3 = inlined_call_operand.vmem [shape: bf16[4,32,8], index: 3, kind: input, shape index: {}]   ;;  %s1232_s4 = inlined_call_operand.hbm [shape: bf16[2,4,8,8], index: 4, kind: output, shape index: {0}]   ;;  %s1233_s5 = inlined_call_operand.hbm [shape: bf16[2,4,8,8], index: 5, kind: output, shape index: {1}]   ;;  %s1234_s6 = inlined_call_operand.hbm [shape: bf16[2,4,8,8], index: 6, kind: output, shape index: {2}]  }
   0x1   :  { %1243 = sst [smem:[#allocation12_spill]] %s1228_s0 }
   0x2   :  { %1244 = sst [smem:[#allocation13_spill]] %s1229_s1 }
   0x3   :  { %1245 = sst [smem:[#allocation14_spill]] %s1230_s2 }
   0x4   :  { %12 = vsyncpa [#allocation3], 0 }
   0x5   :  { %14 = vsyncpa [#allocation3 + $0x1], 0 }
   0x6   :  { %15 = vsyncpa [#allocation5], 0 }
   0x7   :  { %17 = vsyncpa [#allocation5 + $0x1], 0  ;;  %s1012_s21 = smov 0   ;;  %s1014_s22 = smov 0  }
   0x8   :  { %s1016_s23 = smov 0   ;;  %s1018_s24 = smov 0  }
   0x9   :  { %s1020_s25 = smov 0   ;;  %s1022_s26 = smov 0  }
   0xa   :  { %s1024_s27 = smov 0   ;;  %s1026_s28 = smov 0  }
   0xb LB: > { %s1236_s29 = sadd.s32 4294967295, %s975_s28   ;;  %s1235_s30 = sadd.s32 4294967294, %s975_s28   ;;  %s975_s28 = sphi %s1026_s28, %s23_s28   ;;  %s971_s27 = sphi %s1024_s27, %s1269_s27   ;;  %s967_s26 = sphi %s1022_s26, %s1268_s26   ;;  %s963_s25 = sphi %s1020_s25, %s1267_s25   ;;  %s959_s24 = sphi %s1018_s24, %s1266_s24   ;;  %s955_s23 = sphi %s1016_s23, %s1265_s23   ;;  %s951_s22 = sphi %s1014_s22, %s1264_s22   ;;  %s947_s21 = sphi %s1012_s21, %s1263_s21  }
   0xc   : > { %s32_s7 = sadd.s32 1, %s967_s26  ;;  %s35_s8 = sadd.s32 1, %s971_s27 }
   0xd   : > { %p33_p0 = scmp.ge.s32.totalorder %s32_s7, 4  ;;  %p158_p1 = scmp.ne.s32.totalorder %s955_s23, %s951_s22 }
   0xe   : > { %p159_p2 = scmp.eq.s32.totalorder %s1236_s29, 7  ;;  %p164_p5 = scmp.ne.s32.totalorder %s951_s22, %s947_s21 }
   0xf   : > { %s1271_s7 = smov (%p33_p0, %s32_s7), 0  ;;  %s1273_s8 = smov (!%p33_p0, %s35_s8), %s971_s27 }
  0x10   : > { %1246 = sst [smem:[#allocation9_spill]] %s1271_s7  ;;  %s144_s9 = ssub.s32 %s967_s26, %s1271_s7 }
  0x11   : > { %p1065_p3 = por %p159_p2, %p158_p1  ;;  %p37_p4 = scmp.ge.s32.totalorder %s1273_s8, 2 }
  0x12   : > { %p165_p6 = scmp.eq.s32.totalorder %s1235_s30, 7  ;;  %p682_p7 = scmp.ge.s32.totalorder %s975_s28, 1 }
  0x13   : > { %s1275_s8 = smov (%p37_p4, %s1273_s8), 0  ;;  %p270_p9 = scmp.lt.s32.totalorder %s975_s28, 9 }
  0x14   : > { %1248 = sst [smem:[#allocation10_spill]] %s1275_s8  ;;  %p1076_p8 = por %p165_p6, %p164_p5 }
  0x15   : > { %s143_s12 = ssub.s32 %s971_s27, %s1275_s8  ;;  %s148_s13 = sadd.s32 1, %s955_s23 }
  0x16   : > { %s145_s14 = sor.u32 %s144_s9, %s143_s12  ;;  %p271_p10 = pnand %p682_p7, %p270_p9 }
  0x17   : > { %p146_p11 = scmp.eq.s32.totalorder %s145_s14, 0 }
  0x18   : > { %274 = sbr.rel (%p271_p10) target bundleno = 208 (0xd0), region = 36 }
  0x19   : > { %s1085_s15 = scalar_select %p146_p11, %s955_s23, %s148_s13  }
  0x1d   : > { %p328_p12 = scmp.lt.s32.totalorder %s959_s24, 3  ;;  %p324_p13 = scmp.lt.s32.totalorder %s963_s25, 1  ;;  %vm361_vm0 = vcmask 261120   ;;  %vm379_vm1 = vcmask 60416  }
  0x1e   : > { %s1250_s1 = sld [smem:[#allocation13_spill]]  ;;  %s1253_s9 = sadd.s32 4294967295, %s975_s28  }
  0x1f   : > { %s329_s16 = scalar_select %p328_p12, %s959_s24, 3 }
  0x20   : > { %s325_s17 = scalar_select %p324_p13, %s963_s25, 1 }
  0x21   : > { %s731_s18 = sshll.u32 %s329_s16, 4  ;;  %s1251_s2 = sld [smem:[#allocation14_spill]] }
  0x22   : > { %s342_s8 = scalar_lea.vmem %s1231_s3, %s731_s18  ;;  %s686_s7 = sshll.u32 %s325_s17, 2 }
  0x23   : > { %v739_v2 = vld [vmem:[%s342_s8 + $0x8] sm:$0xff]  ;;  %v738_v5 = vld [vmem:[%s342_s8] sm:$0xff]  ;;  %s1252_s0 = sld [smem:[#allocation12_spill]]  ;;  %s723_s17 = sshll.u32 %s963_s25, 2 }
  0x24   : > { %s332_s30 = scalar_lea.vmem %s1250_s1, %s731_s18  ;;  %434 = vmatpush.bf16.msra.mxu2 %v739_v2  ;;  %s841_s29 = scalar_lea.hbm %s1233_s5, 32 }
  0x25   : > { %v735_v0 = vld [vmem:[%s332_s30 + $0x8] sm:$0xff]  ;;  %v734_v3 = vld [vmem:[%s332_s30] sm:$0xff]  ;;  %s464_s30 = sadd.s32 %s959_s24, %s723_s17 }
  0x26   : > { %371 = vmatpush.bf16.msra.mxu0 %v735_v0  ;;  %s724_s8 = sshll.u32 %s464_s30, 2 }
  0x27   : > { %s337_s12 = scalar_lea.vmem %s1251_s2, %s731_s18  ;;  %s1239_s18 = sand.u32 1, %s951_s22  }
  0x28   : > { %v737_v1 = vld [vmem:[%s337_s12 + $0x8] sm:$0xff]  ;;  %v736_v4 = vld [vmem:[%s337_s12] sm:$0xff]  ;;  %435 = vmatpush.bf16.msra.mxu2 %v738_v5  ;;  %s1108_s20 = sshll.u32 %s1239_s18, 2  ;;  %s482_s14 = scalar_lea.hbm %s1233_s5, %s724_s8 }
  0x29   : > { %403 = vmatpush.bf16.msra.mxu1 %v737_v1  ;;  %s327_s19 = scalar_lea.vmem %s1252_s0, %s686_s7  ;;  %s1112_s7 = sand.u32 1, %s1253_s9  }
  0x2a   : > { %372 = vmatpush.bf16.msra.mxu0 %v734_v3  ;;  %v344_v6 = vld [vmem:[%s327_s19] sm:$0xf]  ;;  %s466_s25 = scalar_lea.hbm %s1232_s4, %s724_s8  ;;  %s316_s19 = scalar_lea.vmem [#allocation4], %s1108_s20 }
  0x2b   : > { %719 = vmatmul.msk.bf16.vlgmr.msra.gmra.mxu2 %vm361_vm0, %v344_v6  ;;  %s1121_s24 = sshll.u32 %s316_s19, 4  ;;  %s1123_s17 = sshll.u32 %s482_s14, 4  ;;  %s485_s24 = int_to_ptr.vmem [resolvable:$true] %s1121_s24  ;;  %s487_s17 = int_to_ptr.hbm [resolvable:$true] %s1123_s17 }
  0x2c   : > { %s1240_s30 = scalar_lea.vmem [#allocation2], %s1108_s20  ;;  %s1130_s12 = sshll.u32 %s466_s25, 4  ;;  %s471_s12 = int_to_ptr.hbm [resolvable:$true] %s1130_s12 }
  0x2d   : > { %404 = vmatpush.bf16.msra.mxu1 %v736_v4  ;;  %701 = vmatmul.msk.bf16.vlgmr.msra.gmra.mxu0 %vm361_vm0, %v344_v6  ;;  %s1128_s9 = sshll.u32 %s1240_s30, 4  ;;  %s498_s14 = scalar_lea.hbm %s1234_s6, %s724_s8 }
  0x2e   : > { %1254 = sst [smem:[#allocation11_spill]] %s1128_s9  ;;  %s1242_s16 = scalar_lea.vmem [#allocation6], %s1108_s20 }
  0x2f   : > { %s1143_s25 = sshll.u32 %s1242_s16, 4  ;;  %s1145_s18 = sshll.u32 %s498_s14, 4  ;;  %s501_s25 = int_to_ptr.vmem [resolvable:$true] %s1143_s25  ;;  %s503_s18 = int_to_ptr.hbm [resolvable:$true] %s1145_s18 }
  0x30   : > { %710 = vmatmul.msk.bf16.vlgmr.msra.gmra.mxu1 %vm361_vm0, %v344_v6  ;;  %s449_s30 = scalar_lea.sflag [#allocation5], %s1112_s7  ;;  %s835_s0 = sshra.s32 %s487_s17, 4  ;;  %s836_s0 = int_to_ptr.hbm [resolvable:$true] %s835_s0 }
  0x31   : > { %s837_s1 = scalar_lea.hbm %s836_s0, 4  ;;  %p842_p4 = scmp.lt.s32.totalorder %s836_s0, %s1233_s5 }
  0x32   : > { %p838_p0 = scmp.ne.s32.totalorder %s836_s0, %s837_s1  ;;  %p843_p5 = scmp.lt.s32.totalorder %s841_s29, %s837_s1 }
  0x34   : > { %p839_p1 = pnand %p838_p0, %p1065_p3  ;;  %p844_p6 = por %p843_p5, %p842_p4 }
  0x36   : > { %p840_p2 = pneg %p839_p1 }
  0x38   : > { %p845_p7 = pnand %p844_p6, %p840_p2 }
  0xaa   : > { %v374_v7 = vpop.f32.mrf.mxu0 }
  0xab   : > { %v378_v9 = vpack.c.bf16 %v374_v7, %v374_v7 }
  0xad   : > { %v406_v8 = vpop.f32.mrf.mxu1 }
  0xae   : > { %v410_v10 = vpack.c.bf16 %v406_v8, %v406_v8 }
  0xb0   : > { %411 = vst.msk [vmem:[%s316_s19] sm:$0xf] %vm379_vm1, %v410_v10 }
  0xb1   : > { %848 = shalt.err (!%p845_p7)
}
  0xb2   : > { %741 = dma.vmem_to_hbm [thread:$0]  (%p1065_p3), %s485_s24, 64, %s487_s17, %s449_s30  }
  0xb3   : > { %s1255_s14 = scalar_lea.vmem [#allocation2], %s1108_s20  ;;  %s1256_s8 = sand.u32 1, %s951_s22  }
  0xb4   : > { %380 = vst.msk [vmem:[%s1255_s14] sm:$0xf] %vm379_vm1, %v378_v9  ;;  %s444_s13 = scalar_lea.sflag [#allocation3], %s1256_s8  ;;  %s863_s0 = sshra.s32 %s471_s12, 4  ;;  %s864_s0 = int_to_ptr.hbm [resolvable:$true] %s863_s0 }
  0xb5   : > { %s865_s1 = scalar_lea.hbm %s864_s0, 4  ;;  %s869_s19 = scalar_lea.hbm %s1232_s4, 32 }
  0xb6   : > { %p866_p9 = scmp.ne.s32.totalorder %s864_s0, %s865_s1  ;;  %p870_p12 = scmp.lt.s32.totalorder %s864_s0, %s1232_s4 }
  0xb7   : > { %p871_p13 = scmp.lt.s32.totalorder %s869_s19, %s865_s1 }
  0xb8   : > { %p867_p10 = pnand %p866_p9, %p1065_p3 }
  0xb9   : > { %p872_p0 = por %p871_p13, %p870_p12 }
  0xba   : > { %p868_p11 = pneg %p867_p10 }
  0xbc   : > { %p873_p1 = pnand %p872_p0, %p868_p11 }
  0xbe   : > { %876 = shalt.err (!%p873_p1)
}
  0xbf   : > { %s1257_s24 = sld [smem:[#allocation11_spill]]  ;;  %v437_v11 = vpop.f32.mrf.mxu2  ;;  %v376_v13 = vpop.f32.mrf.mxu0  ;;  %s1259_s2 = scalar_lea.vmem [#allocation6], %s1108_s20 }
  0xc0   : > { %v441_v12 = vpack.c.bf16 %v437_v11, %v437_v11  ;;  %v408_v14 = vpop.f32.mrf.mxu1  ;;  %s891_s16 = sshra.s32 %s503_s18, 4  ;;  %s892_s16 = int_to_ptr.hbm [resolvable:$true] %s891_s16 }
  0xc1   : > { %s893_s14 = scalar_lea.hbm %s892_s16, 4  ;;  %p898_p6 = scmp.lt.s32.totalorder %s892_s16, %s1234_s6 }
  0xc2   : > { %442 = vst.msk [vmem:[%s1259_s2] sm:$0xf] %vm379_vm1, %v441_v12  ;;  %p894_p2 = scmp.ne.s32.totalorder %s892_s16, %s893_s14 }
  0xc4   : > { %p895_p4 = pnand %p894_p2, %p1065_p3 }
  0xc5   : > { %s1258_s17 = int_to_ptr.vmem [resolvable:$true] %s1257_s24 }
  0xc6   : > { %740 = dma.vmem_to_hbm [thread:$0]  (%p1065_p3), %s1258_s17, 64, %s471_s12, %s444_s13  }
  0xc7   : > { %p896_p5 = pneg %p895_p4  ;;  %s897_s12 = scalar_lea.hbm %s1234_s6, 32 }
  0xc8   : > { %p899_p7 = scmp.lt.s32.totalorder %s897_s12, %s893_s14 }
  0xca   : > { %p900_p9 = por %p899_p7, %p898_p6 }
  0xcc   : > { %p901_p10 = pnand %p900_p9, %p896_p5 }
  0xce   : > { %904 = shalt.err (!%p901_p10)
}
  0xcf   : > { %742 = dma.vmem_to_hbm [thread:$0]  (%p1065_p3), %s501_s25, 64, %s503_s18, %s449_s30   ;;  %v439_v15 = vpop.f32.mrf.mxu2 }
  0xd0 PF: > { %p756_p11 = scmp.ge.s32.totalorder %s975_s28, 2  ;;  %s514_s20 = sand.u32 1, %s947_s21  }
  0xd1   : > { %s515_s9 = scalar_lea.sflag [#allocation3], %s514_s20 }
  0xd2   : > { %p747_p12 = pnand %p756_p11, %p1076_p8 }
  0xd4   : > { %p748_p13 = pneg %p747_p12 }
  0xd6   : > { %938 = dma.done.wait (%p748_p13), %s515_s9, 64  }
  0xd7   : > { %940 = vsyncadd (%p748_p13), %s515_s9, 4294967232  ;;  %s1260_s29 = sadd.s32 4294967294, %s975_s28  }
  0xd8   : > { %s524_s19 = sand.u32 1, %s1260_s29  }
  0xd9   : > { %s525_s10 = scalar_lea.sflag [#allocation5], %s524_s19 }
  0xda   : > { %942 = dma.done.wait (%p748_p13), %s525_s10, 128  }
  0xdb   : > { %944 = vsyncadd (%p748_p13), %s525_s10, 4294967168  ;;  %s23_s28 = sadd.s32 1, %s975_s28   ;;  %s1261_s11 = sld [smem:[#allocation9_spill]] }
  0xdc   : > { %p20_p3 = scmp.ge.s32.totalorder %s23_s28, 10   ;;  %s1262_s18 = sld [smem:[#allocation10_spill]] }
  0xdd   : > { %s1263_s21 = smov %s951_s22  ;;  %s1264_s22 = smov %s955_s23 }
  0xde   : > { %s1265_s23 = smov %s1085_s15  ;;  %s1266_s24 = smov %s967_s26 }
  0xdf   : > { %s1267_s25 = smov %s971_s27  ;;  %22 = sbr.rel (!%p20_p3) target bundleno = 11 (0xb), region = 112 }
  0xe1   : > { %s1268_s26 = smov %s1261_s11 }
  0xe2   : > { %s1269_s27 = smov %s1262_s18 }
  0xe4   :  { %541 = vsyncpa [#allocation3], 1 }
  0xe5   :  { %543 = vsyncpa [#allocation3 + $0x1], 1 }
  0xe6   :  { %544 = vsyncpa [#allocation5], 1 }
  0xe7   :  { %546 = vsyncpa [#allocation5 + $0x1], 1 }

</bundles_post_ra>
